<compile_context>
chip_gen: v5e
topology: v5e:2x2
jax: 0.10.0
libtpu: 0.0.40
codegen_flags: <defaults>
</compile_context>

<pallas_src>
import functools

import jax
import jax.numpy as jnp
from jax.experimental import pallas as pl
from jax.experimental.pallas import tpu as pltpu


def _fused_kernel(x_ref, w_ref, shift_ref, o_ref, *, tp, wpo, c2, kd):
    """One grid step = one batch element x one tile of `tp` pooled output rows.

    x_ref:     (ho+1, wpo, kd)   pre-packed im2col input (bf16), row-tile resident
    w_ref:     (kd, 2*c2)        packed conv weight, BN scale folded in (bf16)
    shift_ref: (1, 2*c2)         folded BN shift (f32)
    o_ref:     (tp, wpo*c2)      pooled output rows, lane-dense (f32)
    """
    cb = 2 * tp + 1                      # conv rows for tp pool rows (incl. halo)
    t = pl.program_id(1)
    row0 = pl.multiple_of(t * (2 * tp), 2 * tp)

    # conv rows [2*po0 - 1, 2*po0 + 2*tp - 1]  ==  packed rows [row0, row0 + cb)
    xb = x_ref[pl.ds(row0, cb), :, :]                        # (cb, wpo, kd) bf16
    lhs = xb.reshape(cb * wpo, kd)                           # free: wpo % 8 == 0

    # One deep MXU matmul: both conv-column parities of every pooled column.
    acc = jnp.dot(lhs, w_ref[...],
                  preferred_element_type=jnp.float32)        # (cb*wpo, 2*c2) f32

    # Folded BatchNorm shift + ReLU (scale is already inside w_ref).
    y = jnp.maximum(acc + shift_ref[...], 0.0)
    y = y.reshape(cb, wpo, 2 * c2)

    # ---- fused MaxPool 3x3 / s2 / p1: W axis --------------------------------
    # 0 is a valid pool-padding value only because ReLU made y >= 0.
    y_ev = y[:, :, :c2]                                      # conv col 2q
    y_od = y[:, :, c2:]                                      # conv col 2q+1
    m2 = jnp.maximum(y_ev, y_od)
    y_lft = jnp.concatenate(
        [jnp.zeros((cb, 1, c2), y.dtype), y_od[:, :wpo - 1, :]], axis=1)
    yw = jnp.maximum(m2, y_lft)                              # (cb, wpo, c2)

    # ---- fused MaxPool: H axis ----------------------------------------------
    b0 = yw[0:2 * tp].reshape(tp, 2, wpo, c2)                # band rows 2u, 2u+1
    b1 = yw[1:2 * tp + 1].reshape(tp, 2, wpo, c2)            # band rows 2u+1, 2u+2
    # Band row 0 of the FIRST row tile is conv row -1 (pool padding): remove its
    # contribution with a single-row multiplicative fix-up (it only ever feeds
    # pooled row 0 through b0[:, 0]); interior tiles/rows pay ~nothing.
    u_idx = jax.lax.broadcasted_iota(jnp.int32, (tp, 1, 1), 0)
    top_keep = jnp.where((u_idx == 0) & (t == 0), 0.0, 1.0)
    pooled = jnp.maximum(jnp.maximum(b0[:, 0] * top_keep, b0[:, 1]), b1[:, 1])

    # Lane-dense store: (tp, wpo*c2); last dim is a multiple of 128 for wpo >= 8.
    o_ref[...] = pooled.reshape(tp, wpo * c2).astype(o_ref.dtype)


def _pack_params(weight_oihw, gamma, beta, running_mean, running_var, eps):
    """Fold BN into the conv weight and pack it for the kernel's im2col layout.

    Returns (w_packed, shift2): w_packed is (15*C1, 2*C2) bf16 with the BN scale
    folded in (fold done in f32 before the bf16 cast); shift2 is (1, 2*C2) f32.
    In a real model this is a one-time init cost.
    """
    c2, c1, _, _ = weight_oihw.shape
    scale = gamma / jnp.sqrt(running_var + eps)                 # (C2,) f32
    shift = beta - running_mean * scale
    w_hwio = jnp.transpose(weight_oihw, (2, 3, 1, 0)).astype(jnp.float32)
    w_scaled = w_hwio * scale                                   # fold scale (f32)
    # packed row index = (kh*5 + dcol)*C1 + c ; packed col index = p*C2 + o,
    # where dcol = 2*p + kw is the padded-column offset inside a pooled column.
    wp = jnp.zeros((3, 5, c1, 2, c2), jnp.float32)
    for p in range(2):
        for kw_ in range(3):
            wp = wp.at[:, 2 * p + kw_, :, p, :].set(w_scaled[:, kw_, :, :])
    w_packed = wp.reshape(15 * c1, 2 * c2).astype(jnp.bfloat16)
    shift2 = jnp.tile(shift, 2).reshape(1, 2 * c2).astype(jnp.float32)
    return w_packed, shift2


def _pack_input(x_nchw):
    """NCHW -> pre-packed im2col: out[n, r+1, q, (kh*5+dcol)*C1 + c] =
    x[n, c, 2*r + kh - 1, 4*q + dcol - 1]  (zero outside the image), i.e. every
    tap the conv needs for (conv row r, pooled col q, both column parities).
    """
    n, c1, h, w = x_nchw.shape
    ho, wo = h // 2, w // 2
    wpo = wo // 2
    x_nhwc = jnp.transpose(x_nchw, (0, 2, 3, 1)).astype(jnp.bfloat16)
    xp = jnp.pad(x_nhwc, ((0, 0), (3, 0), (1, 0), (0, 0)))      # rows +3, cols +1
    taps = [xp[:, kh:kh + 2 * ho + 1:2, dc:dc + 4 * (wpo - 1) + 1:4, :]
            for kh in range(3) for dc in range(5)]
    return jnp.concatenate(taps, axis=-1)                       # (n, ho+1, wpo, 15*c1)


@jax.jit
def conv_bn_relu_maxpool(x_nchw, weight_oihw, gamma, beta,
                         running_mean, running_var, *, eps=1e-5):
    """Conv(k=3,s=2,p=1,bias=False) -> BN(eval) -> ReLU -> MaxPool(3,2,1)."""
    n, c1, h, w = x_nchw.shape
    c2, c1_w, kh, kw = weight_oihw.shape
    assert c1 == c1_w and kh == 3 and kw == 3, "module fixes k=3, groups=1"
    assert h % 4 == 0 and w % 4 == 0, "stride-4 stem: H, W must be multiples of 4"

    ho, wo = h // 2, w // 2              # conv output (k=3, s=2, p=1)
    hpo, wpo = ho // 2, wo // 2          # pool output (k=3, s=2, p=1), ho/wo even
    kd = 15 * c1                         # 3 row-taps x 5 col-taps x C1

    # Pool-row tile: the whole extent by default (fewest grid steps); if batch
    # is 1, split rows so both v7x TensorCores still get a parallel step.
    tp = hpo
    if n == 1 and hpo % 16 == 0:
        tp = hpo // 2
    t_tiles = hpo // tp

    x_packed = _pack_input(x_nchw)                        # (n, ho+1, wpo, kd) bf16
    w_packed, shift2 = _pack_params(weight_oihw, gamma, beta,
                                    running_mean, running_var, eps)

    kernel = functools.partial(_fused_kernel, tp=tp, wpo=wpo, c2=c2, kd=kd)

    out_flat = pl.pallas_call(
        kernel,
        out_shape=jax.ShapeDtypeStruct((n, hpo, wpo * c2), jnp.float32),
        grid=(n, t_tiles),
        in_specs=[
            pl.BlockSpec((None, ho + 1, wpo, kd), lambda b, t: (b, 0, 0, 0)),
            pl.BlockSpec((kd, 2 * c2), lambda b, t: (0, 0)),
            pl.BlockSpec((1, 2 * c2), lambda b, t: (0, 0)),
        ],
        out_specs=pl.BlockSpec((None, tp, wpo * c2), lambda b, t: (b, t, 0)),
        compiler_params=pltpu.CompilerParams(
            dimension_semantics=("parallel", "parallel")),
    )(x_packed, w_packed, shift2)

    # TODO(synk): in a full model, keep activations in the packed / lane-dense
    # NHWC layout across layers (and pack weights once at init) so the NCHW
    # glue above and the transpose below disappear from the per-layer path.
    out = out_flat.reshape(n, hpo, wpo, c2)
    return jnp.transpose(out, (0, 3, 1, 2))               # back to NCHW


def _reference(x, weight, gamma, beta, running_mean, running_var, *, eps=1e-5):
    """Plain-JAX reference mirroring the kernel's bf16 rounding of the inputs
    and of the BN-scale-folded weights."""
    scale = gamma / jnp.sqrt(running_var + eps)
    shift = beta - running_mean * scale
    xb = x.astype(jnp.bfloat16).astype(jnp.float32)
    wb = (weight * scale.reshape(-1, 1, 1, 1)).astype(jnp.bfloat16).astype(jnp.float32)
    y = jax.lax.conv_general_dilated(
        xb, wb, window_strides=(2, 2), padding=((1, 1), (1, 1)),
        dimension_numbers=("NCHW", "OIHW", "NCHW"))
    y = jnp.maximum(y + shift.reshape(1, -1, 1, 1), 0.0)
    y = jax.lax.reduce_window(
        y, -jnp.inf, jax.lax.max,
        window_dimensions=(1, 1, 3, 3), window_strides=(1, 1, 2, 2),
        padding=((0, 0), (0, 0), (1, 1), (1, 1)))
    return y


if __name__ == "__main__":
    key = jax.random.PRNGKey(0)
    k_x, k_w, k_g, k_b, k_m, k_v = jax.random.split(key, 6)

    N, C1, C2, H, W = 2, 4, 16, 32, 32

    x = jax.random.normal(k_x, (N, C1, H, W), dtype=jnp.float32)
    weight = jax.random.normal(k_w, (C2, C1, 3, 3), dtype=jnp.float32) * 0.1
    gamma = jax.random.normal(k_g, (C2,), dtype=jnp.float32) * 0.1 + 1.0
    beta = jax.random.normal(k_b, (C2,), dtype=jnp.float32) * 0.1
    running_mean = jax.random.normal(k_m, (C2,), dtype=jnp.float32) * 0.1
    running_var = jax.random.uniform(k_v, (C2,), dtype=jnp.float32,
                                     minval=0.5, maxval=1.5)

    out = conv_bn_relu_maxpool(x, weight, gamma, beta, running_mean, running_var)
    out = jax.block_until_ready(out)

    ref = _reference(x, weight, gamma, beta, running_mean, running_var)
    assert out.shape == (N, C2, H // 4, W // 4), out.shape
    max_err = float(jnp.max(jnp.abs(out - ref)))
    assert jnp.allclose(out, ref, rtol=1e-2, atol=1e-2), max_err

    print("KERNEL_OK")
</pallas_src>

<mosaic_0001>
module attributes {stable_mosaic.version = 11 : i64} {
  func.func @_fused_kernel(%arg0: i32, %arg1: i32, %arg2: memref<1x17x8x60xbf16, #tpu.memory_space<vmem>>, %arg3: memref<60x32xbf16, #tpu.memory_space<vmem>>, %arg4: memref<1x32xf32, #tpu.memory_space<vmem>>, %arg5: memref<1x8x128xf32, #tpu.memory_space<vmem>>) attributes {dimension_semantics = [#tpu.dimension_semantics<parallel>, #tpu.dimension_semantics<parallel>], iteration_bounds = array<i64: 2, 1>, scalar_prefetch = 0 : i64, scratch_operands = 0 : i64, tpu.core_type = #tpu.core_type<tc>, window_params = [{transform_indices = @transform_0, window_bounds = array<i64: 1, 17, 8, 60>}, {pipeline_mode = #tpu.pipeline_mode<synchronous>, transform_indices = @transform_1, window_bounds = array<i64: 60, 32>}, {pipeline_mode = #tpu.pipeline_mode<synchronous>, transform_indices = @transform_2, window_bounds = array<i64: 1, 32>}, {transform_indices = @transform_3, window_bounds = array<i64: 1, 8, 128>}]} {
    %c16_i32 = arith.constant 16 : i32
    %0 = arith.muli %arg1, %c16_i32 : i32
    %1 = tpu.assume_multiple %0, 16 : i32
    %c0 = arith.constant 0 : index
    %2 = arith.index_cast %1 : i32 to index
    %c0_0 = arith.constant 0 : index
    %c0_1 = arith.constant 0 : index
    %3 = vector.load %arg2[%c0, %2, %c0_0, %c0_1] : memref<1x17x8x60xbf16, #tpu.memory_space<vmem>>, vector<1x17x8x60xbf16>
    %4 = vector.shape_cast %3 : vector<1x17x8x60xbf16> to vector<17x8x60xbf16>
    %5 = vector.shape_cast %4 : vector<17x8x60xbf16> to vector<136x60xbf16>
    %c0_2 = arith.constant 0 : index
    %c0_3 = arith.constant 0 : index
    %6 = vector.load %arg3[%c0_2, %c0_3] : memref<60x32xbf16, #tpu.memory_space<vmem>>, vector<60x32xbf16>
    %cst = arith.constant dense<0.000000e+00> : vector<136x32xf32>
    %7 = tpu.matmul %5, %6, %cst {dimension_numbers = #tpu.dot_dimension_numbers<[1], [0], [0], [1], [0, 0, 1, 1], [], []>} : vector<136x60xbf16>, vector<60x32xbf16>, vector<136x32xf32> -> vector<136x32xf32>
    %c0_4 = arith.constant 0 : index
    %c0_5 = arith.constant 0 : index
    %8 = vector.load %arg4[%c0_4, %c0_5] : memref<1x32xf32, #tpu.memory_space<vmem>>, vector<1x32xf32>
    %9 = vector.broadcast %8 : vector<1x32xf32> to vector<136x32xf32>
    %10 = arith.addf %7, %9 : vector<136x32xf32>
    %cst_6 = arith.constant 0.000000e+00 : f32
    %11 = vector.broadcast %cst_6 : f32 to vector<136x32xf32>
    %12 = arith.maximumf %10, %11 : vector<136x32xf32>
    %13 = vector.shape_cast %12 : vector<136x32xf32> to vector<17x8x32xf32>
    %14 = vector.extract_strided_slice %13 {offsets = [0, 0, 0], sizes = [17, 8, 16], strides = [1, 1, 1]} : vector<17x8x32xf32> to vector<17x8x16xf32>
    %15 = vector.extract_strided_slice %13 {offsets = [0, 0, 16], sizes = [17, 8, 16], strides = [1, 1, 1]} : vector<17x8x32xf32> to vector<17x8x16xf32>
    %16 = arith.maximumf %14, %15 : vector<17x8x16xf32>
    %cst_7 = arith.constant 0.000000e+00 : f32
    %17 = vector.broadcast %cst_7 : f32 to vector<17x1x16xf32>
    %18 = vector.extract_strided_slice %15 {offsets = [0, 0, 0], sizes = [17, 7, 16], strides = [1, 1, 1]} : vector<17x8x16xf32> to vector<17x7x16xf32>
    %19 = tpu.concatenate %17, %18 in 1 : vector<17x1x16xf32>, vector<17x7x16xf32> -> vector<17x8x16xf32>
    %20 = arith.maximumf %16, %19 : vector<17x8x16xf32>
    %21 = vector.extract_strided_slice %20 {offsets = [0, 0, 0], sizes = [16, 8, 16], strides = [1, 1, 1]} : vector<17x8x16xf32> to vector<16x8x16xf32>
    %22 = vector.shape_cast %21 : vector<16x8x16xf32> to vector<8x2x8x16xf32>
    %23 = vector.extract_strided_slice %20 {offsets = [1, 0, 0], sizes = [16, 8, 16], strides = [1, 1, 1]} : vector<17x8x16xf32> to vector<16x8x16xf32>
    %24 = vector.shape_cast %23 : vector<16x8x16xf32> to vector<8x2x8x16xf32>
    %25 = tpu.iota {dimensions = array<i32: 0>} : vector<8x1x1xi32>
    %c0_i32 = arith.constant 0 : i32
    %26 = vector.broadcast %c0_i32 : i32 to vector<8x1x1xi32>
    %27 = arith.cmpi eq, %25, %26 : vector<8x1x1xi32>
    %c0_i32_8 = arith.constant 0 : i32
    %28 = arith.cmpi eq, %arg1, %c0_i32_8 : i32
    %29 = vector.broadcast %28 : i1 to vector<8x1x1xi1>
    %30 = arith.andi %27, %29 : vector<8x1x1xi1>
    %cst_9 = arith.constant 0.000000e+00 : f32
    %cst_10 = arith.constant 1.000000e+00 : f32
    %31 = vector.broadcast %cst_9 : f32 to vector<8x1x1xf32>
    %32 = vector.broadcast %cst_10 : f32 to vector<8x1x1xf32>
    %33 = arith.select %30, %31, %32 : vector<8x1x1xi1>, vector<8x1x1xf32>
    %34 = vector.extract_strided_slice %22 {offsets = [0, 0, 0, 0], sizes = [8, 1, 8, 16], strides = [1, 1, 1, 1]} : vector<8x2x8x16xf32> to vector<8x1x8x16xf32>
    %35 = vector.shape_cast %34 : vector<8x1x8x16xf32> to vector<8x8x16xf32>
    %36 = vector.broadcast %33 : vector<8x1x1xf32> to vector<8x8x16xf32>
    %37 = arith.mulf %35, %36 : vector<8x8x16xf32>
    %38 = vector.extract_strided_slice %22 {offsets = [0, 1, 0, 0], sizes = [8, 1, 8, 16], strides = [1, 1, 1, 1]} : vector<8x2x8x16xf32> to vector<8x1x8x16xf32>
    %39 = vector.shape_cast %38 : vector<8x1x8x16xf32> to vector<8x8x16xf32>
    %40 = arith.maximumf %37, %39 : vector<8x8x16xf32>
    %41 = vector.extract_strided_slice %24 {offsets = [0, 1, 0, 0], sizes = [8, 1, 8, 16], strides = [1, 1, 1, 1]} : vector<8x2x8x16xf32> to vector<8x1x8x16xf32>
    %42 = vector.shape_cast %41 : vector<8x1x8x16xf32> to vector<8x8x16xf32>
    %43 = arith.maximumf %40, %42 : vector<8x8x16xf32>
    %44 = vector.shape_cast %43 : vector<8x8x16xf32> to vector<8x128xf32>
    %c0_11 = arith.constant 0 : index
    %c0_12 = arith.constant 0 : index
    %c0_13 = arith.constant 0 : index
    %45 = vector.load %arg5[%c0_11, %c0_12, %c0_13] : memref<1x8x128xf32, #tpu.memory_space<vmem>>, vector<1x8x128xf32>
    %46 = vector.shape_cast %45 : vector<1x8x128xf32> to vector<8x128xf32>
    %47 = vector.shape_cast %44 : vector<8x128xf32> to vector<1x8x128xf32>
    tpu.vector_store %arg5[%c0_11, %c0_12, %c0_13], %47 {strides = array<i32>} : memref<1x8x128xf32, #tpu.memory_space<vmem>>, vector<1x8x128xf32>,
    return
  }
  func.func @transform_0(%arg0: i32, %arg1: i32) -> (i32, i32, i32, i32) {
    %c0_i32 = arith.constant 0 : i32
    %c0_i32_0 = arith.constant 0 : i32
    %c0_i32_1 = arith.constant 0 : i32
    %c0_i32_2 = arith.constant 0 : i32
    return %arg0, %c0_i32, %c0_i32_0, %c0_i32_1 : i32, i32, i32, i32
  }
  func.func @transform_1(%arg0: i32, %arg1: i32) -> (i32, i32) {
    %c0_i32 = arith.constant 0 : i32
    %c0_i32_0 = arith.constant 0 : i32
    %c0_i32_1 = arith.constant 0 : i32
    return %c0_i32, %c0_i32_0 : i32, i32
  }
  func.func @transform_2(%arg0: i32, %arg1: i32) -> (i32, i32) {
    %c0_i32 = arith.constant 0 : i32
    %c0_i32_0 = arith.constant 0 : i32
    %c0_i32_1 = arith.constant 0 : i32
    return %c0_i32, %c0_i32_0 : i32, i32
  }
  func.func @transform_3(%arg0: i32, %arg1: i32) -> (i32, i32, i32) {
    %c0_i32 = arith.constant 0 : i32
    %c0_i32_0 = arith.constant 0 : i32
    return %arg0, %arg1, %c0_i32 : i32, i32, i32
  }
}

</mosaic_0001>

<bundles_post_ra>
// kernel: tile.8
= control target key start
LH: loop header
LB: loop body
LE: loop exit
PB: predicated region body
PF: predicated region fallthrough
CT: control target
= control target key end

     0   :  { %s22_s0 = inlined_call_operand.vmem [shape: f32[16], index: 0, kind: input, shape index: {}]   ;;  %s23_s1 = inlined_call_operand.vmem [shape: f32[2,16], index: 1, kind: output, shape index: {}]  }
   0x1   :  { %v4_v0 = vld [vmem:[%s22_s0] ss:$0 sm:$0xff] }
   0x2   :  { %5 = vst [vmem:[%s23_s1] sm:$0x3] %v4_v0 }

// kernel: tile.9
= control target key start
LH: loop header
LB: loop body
LE: loop exit
PB: predicated region body
PF: predicated region fallthrough
CT: control target
= control target key end

     0   :  { %vm7_vm0 = vcmask 130048   ;;  %vm13_vm1 = vcmask 261248   ;;  %s39_s0 = inlined_call_operand.vmem [shape: f32[2,16], index: 0, kind: input, shape index: {}]   ;;  %s40_s1 = inlined_call_operand.vmem [shape: f32[1,32], index: 1, kind: output, shape index: {}]  }
   0x1   :  { %v4_v0 = vld [vmem:[%s39_s0] sm:$0x3]  ;;  %s22_s0 = smov 16  }
   0x2   :  { %5 = vst [vmem:[#allocation1] sm:$0x3] %v4_v0 }
   0x9   :  { %v10_v1 = vld [vmem:[#allocation1 + $0x1] sm:$0x1]   ;;  %v6_v2 = vld [vmem:[#allocation1] sm:$0x1]  }
   0xa   :  { %11 = vrot.lane.b32.xlu0 %v10_v1, %s22_s0  ;;  %8 = vst.msk [vmem:[#allocation0] sm:$0x1] %vm7_vm0, %v6_v2  }
  0x7c   :  { %v12_v3 = vpop.permute.xlu0 %11  }
  0x7d   :  { %14 = vst.msk [vmem:[#allocation0] sm:$0x1] %vm13_vm1, %v12_v3  }
  0x84   :  { %v17_v4 = vld [vmem:[#allocation0] sm:$0x1] }
  0x85   :  { %20 = vst [vmem:[%s40_s1] sm:$0x1] %v17_v4 }

// kernel: conv_bn_relu_maxpool.1
= control target key start
LH: loop header
LB: loop body
LE: loop exit
PB: predicated region body
PF: predicated region fallthrough
CT: control target
= control target key end

     0   :  { %s1007_s12 = smov 0   ;;  %s1009_s13 = smov 0   ;;  %s1286_s0 = inlined_call_operand.vmem [shape: bf16[2,17,8,60], index: 0, kind: input, shape index: {}]   ;;  %s1287_s1 = inlined_call_operand.vmem [shape: bf16[60,32], index: 1, kind: input, shape index: {}]   ;;  %s1288_s2 = inlined_call_operand.vmem [shape: f32[1,32], index: 2, kind: input, shape index: {}]   ;;  %s1289_s3 = inlined_call_operand.vmem [shape: f32[2,8,128], index: 3, kind: output, shape index: {}]  }
   0x1   :  { %s1011_s14 = smov 0  }
   0x2 LB: > { %s25_s15 = sadd.s32 1, %s972_s13  ;;  %p833_p0 = scmp.ge.s32.totalorder %s976_s14, 1  ;;  %s976_s14 = sphi %s1011_s14, %s13_s14   ;;  %s972_s13 = sphi %s1009_s13, %s1291_s13   ;;  %s968_s12 = sphi %s1007_s12, %s1290_s12  }
   0x3   : > { %p27_p1 = scmp.ge.s32.totalorder %s25_s15, 2  ;;  %p151_p2 = scmp.lt.s32.totalorder %s976_s14, 3 }
   0x5   : > { %s1293_s15 = smov (%p27_p1, %s25_s15), 0  ;;  %p152_p3 = pnand %p833_p0, %p151_p2 }
   0x6   : > { %p177_p4 = scmp.lt.s32.totalorder (!%p152_p3), %s968_s12, 1  ;;  %s978_s5 = smov (!%p152_p3), 112  }
   0x7   : > { %155 = sbr.rel (%p152_p3) target bundleno = 513 (0x201), region = 32  ;;  %s981_s6 = smov (!%p152_p3), 48  }
   0x8   : > { %s982_s7 = smov (!%p152_p3), 32   ;;  %s983_s8 = smov (!%p152_p3), 16  }
   0x9   : > { %s984_s9 = smov (!%p152_p3), 96   ;;  %s985_s10 = smov (!%p152_p3), 80  }
   0xa   : > { %s986_s11 = smov (!%p152_p3), 64  }
   0xc   : > { %v882_v0 = vld [vmem:[%s1287_s1 + $0x18] sm:$0xf]  ;;  %v906_v1 = vld [vmem:[%s1287_s1 + $0x18] sm:$0x30]  ;;  %vm316_vm0 = vcmask 1045504   ;;  %v905_v4 = vld [vmem:[%s1287_s1 + $0x10] sm:$0xff] }
   0xd   : > { %v883_v2 = vor.u32 %v906_v1, %v882_v0  ;;  %s1295_s12 = smov (!%p177_p4, %s968_s12), 1  ;;  %v904_v5 = vld [vmem:[%s1287_s1 + $0x8] sm:$0xff]  ;;  %v903_v6 = vld [vmem:[%s1287_s1] sm:$0xff]  ;;  %vm288_vm1 = vcmask 490496   ;;  %vm543_vm2 = vcmask 1040384   ;;  %vm601_vm3 = vcmask 1047556  }
   0xe   : > { %s919_s24 = smul.u32 68, %s1295_s12  ;;  %v1058_v18 = vld [vmem:[%s1288_s2] ss:$0 sm:$0xff]  ;;  %vm741_vm4 = vcmask 130048   ;;  %vm743_vm5 = vcmask 261120   ;;  %vm745_vm6 = vcmask 392192  }
   0xf   : > { %v318_v3 = vsel %vm316_vm0, %v883_v2, 0  ;;  %vm747_vm7 = vcmask 523264   ;;  %vm749_vm8 = vcmask 654336   ;;  %s835_s16 = sshll.u32 %s1295_s12, 3  ;;  %vm751_vm9 = vcmask 785408  }
  0x10   : > { %324 = vmatpush.bf16.msra.mxu0 %v318_v3  ;;  %907 = vmatpush.bf16.msra.mxu1 %v318_v3  ;;  %s181_s29 = scalar_lea.vmem %s1286_s0, %s919_s24  ;;  %vm753_vm10 = vcmask 916480   ;;  %s188_s19 = scalar_lea.vmem %s1289_s3, %s835_s16 }
  0x11   : > { %908 = vmatpush.bf16.msra.mxu2 %v318_v3  ;;  %909 = vmatpush.bf16.msra.mxu3 %v318_v3  ;;  %v895_v7 = vld [vmem:[%s181_s29] sm:$0xff]  ;;  %v897_v8 = vld [vmem:[%s181_s29 + $0x10] sm:$0xff]  ;;  %v902_v10 = vld [vmem:[%s181_s29 + $0x38] sm:$0xff] }
  0x12   : > { %v899_v9 = vld [vmem:[%s181_s29 + $0x20] sm:$0xff]  ;;  %v896_v13 = vld [vmem:[%s181_s29 + $0x8] sm:$0xff]  ;;  %v898_v14 = vld [vmem:[%s181_s29 + $0x18] sm:$0xff] }
  0x13   : > { %v209_v11 = vld [vmem:[%s181_s29 + $0x40] sm:$0xf]  ;;  %v900_v16 = vld [vmem:[%s181_s29 + $0x28] sm:$0xff]  ;;  %v901_v17 = vld [vmem:[%s181_s29 + $0x30] sm:$0xff] }
  0x14   : > { %325 = vmatpush.bf16.msra.mxu0 %v905_v4  ;;  %910 = vmatpush.bf16.msra.mxu1 %v905_v4  ;;  %v255_v12 = vunpack.c.l.b16 %v209_v11 }
  0x15   : > { %911 = vmatpush.bf16.msra.mxu2 %v905_v4  ;;  %912 = vmatpush.bf16.msra.mxu3 %v905_v4 }
  0x16   : > { %v264_v15 = vpack.c.b16 %v255_v12, %v255_v12 }
  0x18   : > { %326 = vmatpush.bf16.msra.mxu0 %v904_v5  ;;  %913 = vmatpush.bf16.msra.mxu1 %v904_v5 }
  0x19   : > { %914 = vmatpush.bf16.msra.mxu2 %v904_v5  ;;  %915 = vmatpush.bf16.msra.mxu3 %v904_v5 }
  0x1c   : > { %327 = vmatpush.bf16.msra.mxu0 %v903_v6  ;;  %916 = vmatpush.bf16.msra.mxu1 %v903_v6 }
  0x1d   : > { %917 = vmatpush.bf16.msra.mxu2 %v903_v6  ;;  %918 = vmatpush.bf16.msra.mxu3 %v903_v6 }
  0x1f   : > { %884 = vmatmul.msk.bf16.vlgmr.msra.gmra.mxu0 %vm288_vm1, %v895_v7  ;;  %886 = vmatmul.msk.bf16.vlgmr.msra.gmra.mxu1 %vm288_vm1, %v897_v8 }
  0x20   : > { %888 = vmatmul.msk.bf16.vlgmr.msra.gmra.mxu2 %vm288_vm1, %v899_v9  ;;  %891 = vmatmul.msk.bf16.vlgmr.msra.gmra.mxu3 %vm288_vm1, %v902_v10 }
  0x2f   : > { %885 = vmatmul.msk.bf16.gmra.mxu0 %vm288_vm1, %v896_v13  ;;  %887 = vmatmul.msk.bf16.gmra.mxu1 %vm288_vm1, %v898_v14 }
  0x30   : > { %892 = vmatmul.msk.bf16.gmra.mxu3 %vm288_vm1, %v264_v15  ;;  %889 = vmatmul.msk.bf16.gmra.mxu2 %vm288_vm1, %v900_v16 }
  0x40   : > { %890 = vmatmul.msk.bf16.gmra.mxu2 %vm288_vm1, %v901_v17 }
  0x9c   : > { %v329_v19 = vpop.f32.mrf.mxu0  ;;  %v339_v20 = vpop.f32.mrf.mxu1 }
  0x9d   : > { %v330_v21 = vadd.f32 %v1058_v18, %v329_v19  ;;  %v340_v22 = vadd.f32 %v1058_v18, %v339_v20 }
  0x9f   : > { %v1062_v23 = vmax.f32 %v330_v21, 0.0  ;;  %v1064_v24 = vmax.f32 %v340_v22, 0.0 }
  0xa1   : > { %415 = vrot.lane.b32.xlu2 %v1064_v24, %s978_s5  ;;  %407 = vrot.lane.b32.xlu0 %v1062_v23, %s978_s5  ;;  %v475_v32 = vrot.slane %v1062_v23, 7  ;;  %v479_v36 = vrot.slane %v1064_v24, 7 }
  0xa3   : > { %v349_v25 = vpop.f32.mrf.mxu2  ;;  %v364_v26 = vpop.f32.mrf.mxu3 }
  0xa4   : > { %v350_v27 = vadd.f32 %v1058_v18, %v349_v25  ;;  %v365_v28 = vadd.f32 %v1058_v18, %v364_v26  ;;  %v331_v29 = vpop.f32.mrf.mxu0  ;;  %v341_v33 = vpop.f32.mrf.mxu1 }
  0xa5   : > { %v332_v34 = vadd.f32 %v1058_v18, %v331_v29  ;;  %v342_v39 = vadd.f32 %v1058_v18, %v341_v33 }
  0xa6   : > { %v1072_v30 = vmax.f32 %v350_v27, 0.0  ;;  %v1074_v31 = vmax.f32 %v365_v28, 0.0 }
  0xa7   : > { %v1085_v38 = vmax.f32 %v332_v34, 0.0  ;;  %v1093_v42 = vmax.f32 %v342_v39, 0.0 }
  0xa8   : > { %435 = vrot.lane.b32.xlu1 %v1074_v31, %s978_s5  ;;  %v483_v37 = vrot.slane %v1072_v30, 7  ;;  %v489_v53 = vrot.slane %v1074_v31, 7 }
  0xa9   : > { %423 = vrot.lane.b32.xlu0 %v1072_v30, %s978_s5  ;;  %492 = vrot.lane.b32.xlu2 %v475_v32, %s978_s5  ;;  %v480_v47 = vrot.slane %v1093_v42, 7  ;;  %v476_v22 = vrot.slane %v1085_v38, 7 }
  0xab   : > { %v366_v35 = vpop.f32.mrf.mxu3  ;;  %v351_v51 = vpop.f32.mrf.mxu2 }
  0xac   : > { %v334_v40 = vpop.f32.mrf.mxu0  ;;  %v344_v43 = vpop.f32.mrf.mxu1  ;;  %v367_v52 = vadd.f32 %v1058_v18, %v366_v35  ;;  %v352_v61 = vadd.f32 %v1058_v18, %v351_v51 }
  0xad   : > { %v335_v41 = vadd.f32 %v1058_v18, %v334_v40  ;;  %v345_v46 = vadd.f32 %v1058_v18, %v344_v43 }
  0xae   : > { %v1114_v55 = vmax.f32 %v367_v52, 0.0  ;;  %v1128_v63 = vmax.f32 %v352_v61, 0.0 }
  0xaf   : > { %v1095_v45 = vmax.f32 %v335_v41, 0.0  ;;  %v1099_v48 = vmax.f32 %v345_v46, 0.0 }
  0xb0   : > { %508 = vrot.lane.b32.xlu1 %v483_v37, %s978_s5  ;;  %v490_v59 = vrot.slane %v1114_v55, 7  ;;  %v484_v7 = vrot.slane %v1128_v63, 7 }
  0xb1   : > { %409 = vrot.lane.b32.xlu0 %v1085_v38, %s978_s5  ;;  %500 = vrot.lane.b32.xlu2 %v479_v36, %s978_s5  ;;  %v481_v50 = vrot.slane %v1099_v48, 7  ;;  %v477_v1 = vrot.slane %v1095_v45, 7 }
  0xb3   : > { %v369_v44 = vpop.f32.mrf.mxu3  ;;  %v354_v57 = vpop.f32.mrf.mxu2 }
  0xb4   : > { %v370_v54 = vadd.f32 %v1058_v18, %v369_v44  ;;  %v336_v58 = vpop.f32.mrf.mxu0  ;;  %v346_v0 = vpop.f32.mrf.mxu1  ;;  %v355_v4 = vadd.f32 %v1058_v18, %v354_v57 }
  0xb5   : > { %v337_v60 = vadd.f32 %v1058_v18, %v336_v58  ;;  %v347_v3 = vadd.f32 %v1058_v18, %v346_v0 }
  0xb6   : > { %v1116_v56 = vmax.f32 %v370_v54, 0.0  ;;  %v1140_v6 = vmax.f32 %v355_v4, 0.0 }
  0xb7   : > { %v1126_v62 = vmax.f32 %v337_v60, 0.0  ;;  %v1138_v5 = vmax.f32 %v347_v3, 0.0 }
  0xb8   : > { %411 = vrot.lane.b32.xlu1 %v1095_v45, %s978_s5  ;;  %v485_v11 = vrot.slane %v1140_v6, 7  ;;  %v491_v25 = vrot.slane %v1116_v56, 7 }
  0xb9   : > { %502 = vrot.lane.b32.xlu0 %v480_v47, %s978_s5  ;;  %417 = vrot.lane.b32.xlu2 %v1093_v42, %s978_s5  ;;  %v478_v10 = vrot.slane %v1126_v62, 7  ;;  %v482_v12 = vrot.slane %v1138_v5, 7 }
  0xbb   : > { %v371_v49 = vpop.f32.mrf.mxu3  ;;  %v356_v2 = vpop.f32.mrf.mxu2 }
  0xbc   : > { %v357_v14 = vadd.f32 %v1058_v18, %v356_v2 }
  0xbe   : > { %v1159_v17 = vmax.f32 %v357_v14, 0.0 }
  0xc0   : > { %504 = vrot.lane.b32.xlu1 %v481_v50, %s978_s5 }
  0xc1   : > { %419 = vrot.lane.b32.xlu0 %v1099_v48, %s978_s5  ;;  %520 = vrot.lane.b32.xlu2 %v489_v53, %s978_s5 }
  0xc3   : > { %v359_v8 = vpop.f32.mrf.mxu2 }
  0xc4   : > { %v360_v9 = vadd.f32 %v1058_v18, %v359_v8 }
  0xc6   : > { %v1153_v13 = vmax.f32 %v360_v9, 0.0 }
  0xc8   : > { %439 = vrot.lane.b32.xlu1 %v1116_v56, %s978_s5  ;;  %v487_v16 = vrot.slane %v1153_v13, 7 }
  0xc9   : > { %522 = vrot.lane.b32.xlu0 %v490_v59, %s978_s5  ;;  %437 = vrot.lane.b32.xlu2 %v1114_v55, %s978_s5 }
  0xcb   : > { %v361_v15 = vpop.f32.mrf.mxu2 }
  0xcc   : > { %v362_v19 = vadd.f32 %v1058_v18, %v361_v15  ;;  %v486_v18 = vrot.slane %v1159_v17, 7 }
  0xce   : > { %v1167_v20 = vmax.f32 %v362_v19, 0.0 }
  0xd0   : > { %413 = vrot.lane.b32.xlu1 %v1126_v62, %s978_s5  ;;  %v488_v21 = vrot.slane %v1167_v20, 7 }
  0xd1   : > { %496 = vrot.lane.b32.xlu0 %v477_v1, %s978_s5  ;;  %425 = vrot.lane.b32.xlu2 %v1128_v63, %s978_s5 }
  0xd8   : > { %421 = vrot.lane.b32.xlu1 %v1138_v5, %s978_s5 }
  0xd9   : > { %427 = vrot.lane.b32.xlu0 %v1140_v6, %s978_s5  ;;  %510 = vrot.lane.b32.xlu2 %v484_v7, %s978_s5 }
  0xe0   : > { %498 = vrot.lane.b32.xlu1 %v478_v10, %s978_s5 }
  0xe1   : > { %512 = vrot.lane.b32.xlu0 %v485_v11, %s978_s5  ;;  %506 = vrot.lane.b32.xlu2 %v482_v12, %s978_s5 }
  0xe8   : > { %429 = vrot.lane.b32.xlu1 %v1159_v17, %s978_s5 }
  0xe9   : > { %516 = vrot.lane.b32.xlu0 %v487_v16, %s978_s5  ;;  %431 = vrot.lane.b32.xlu2 %v1153_v13, %s978_s5 }
  0xf0   : > { %518 = vrot.lane.b32.xlu1 %v488_v21, %s978_s5 }
  0xf1   : > { %433 = vrot.lane.b32.xlu0 %v1167_v20, %s978_s5  ;;  %494 = vrot.lane.b32.xlu2 %v476_v22, %s978_s5 }
  0xf8   : > { %514 = vrot.lane.b32.xlu1 %v486_v18, %s978_s5 }
  0xf9   : > { %524 = vrot.lane.b32.xlu0 %v491_v25, %s978_s5 }
  0xfb   : > { %v416_v26 = vpop.permute.xlu2 %415 }
  0xfc   : > { %v462_v4 = vmax.f32 %v1064_v24, %v416_v26 }
 0x103   : > { %v493_v27 = vpop.permute.xlu2 %492 }
 0x104   : > { %v544_v34 = vsel %vm543_vm2, 0.0, %v493_v27  ;;  %v979_v27 = vmov 1983009808  }
 0x10b   : > { %v501_v28 = vpop.permute.xlu2 %500 }
 0x10c   : > { %v548_v2 = vsel %vm543_vm2, 0.0, %v501_v28  ;;  %v606_v28 = vunpack.c.l.s4 %v979_v27 }
 0x10d   : > { %v565_v8 = vmax.f32 %v462_v4, %v548_v2 }
 0x113   : > { %v408_v29 = vpop.permute.xlu0 %407  ;;  %v418_v32 = vpop.permute.xlu2 %417 }
 0x114   : > { %v458_v33 = vmax.f32 %v1062_v23, %v408_v29  ;;  %v463_v0 = vmax.f32 %v1093_v42, %v418_v32 }
 0x116   : > { %v561_v35 = vmax.f32 %v458_v33, %v544_v34 }
 0x118   : > { %v583_v11 = vmul.f32 0.0, %v561_v35  ;;  %v1212_v35 = vunpack.c.0.s8 %v606_v28 }
 0x11a   : > { %v1181_v36 = vpop.permute.xlu1 %435 }
 0x11b   : > { %v424_v37 = vpop.permute.xlu0 %423  ;;  %v1183_v39 = vpop.permute.xlu2 %520 }
 0x11c   : > { %v466_v40 = vmax.f32 %v1072_v30, %v424_v37 }
 0x122   : > { %v509_v41 = vpop.permute.xlu1 %508 }
 0x123   : > { %v552_v43 = vsel %vm543_vm2, 0.0, %v509_v41  ;;  %v410_v44 = vpop.permute.xlu0 %409  ;;  %v1187_v46 = vpop.permute.xlu2 %437 }
 0x124   : > { %v1189_v47 = vmax.f32 %v466_v40, %v552_v43  ;;  %v459_v12 = vmax.f32 %v1085_v38, %v410_v44 }
 0x12a   : > { %v412_v49 = vpop.permute.xlu1 %411 }
 0x12b   : > { %v503_v23 = vpop.permute.xlu0 %502  ;;  %v1191_v50 = vpop.permute.xlu2 %425  ;;  %v460_v24 = vmax.f32 %v1095_v45, %v412_v49 }
 0x12c   : > { %v549_v61 = vsel %vm543_vm2, 0.0, %v503_v23 }
 0x12d   : > { %v566_v7 = vmax.f32 %v463_v0, %v549_v61 }
 0x12f   : > { %v586_v14 = vmax.f32 %v565_v8, %v566_v7 }
 0x132   : > { %v505_v51 = vpop.permute.xlu1 %504 }
 0x133   : > { %v420_v52 = vpop.permute.xlu0 %419  ;;  %v511_v53 = vpop.permute.xlu2 %510  ;;  %v550_v3 = vsel %vm543_vm2, 0.0, %v505_v51 }
 0x134   : > { %v464_v1 = vmax.f32 %v1099_v48, %v420_v52 }
 0x136   : > { %v567_v9 = vmax.f32 %v464_v1, %v550_v3  ;;  %v553_v3 = vsel %vm543_vm2, 0.0, %v511_v53 }
 0x138   : > { %v594_v22 = vmax.f32 %v586_v14, %v567_v9 }
 0x13a   : > { %v1193_v54 = vpop.permute.xlu1 %439 }
 0x13b   : > { %v1195_v57 = vpop.permute.xlu0 %522  ;;  %v507_v30 = vpop.permute.xlu2 %506 }
 0x13c   : > { %v551_v48 = vsel %vm543_vm2, 0.0, %v507_v30  ;;  %v559_v27 = vsel %vm543_vm2, 0.0, %v1195_v57 }
 0x142   : > { %v414_v58 = vpop.permute.xlu1 %413 }
 0x143   : > { %v497_v59 = vpop.permute.xlu0 %496  ;;  %v1197_v60 = vpop.permute.xlu2 %431  ;;  %v461_v33 = vmax.f32 %v1126_v62, %v414_v58 }
 0x144   : > { %v546_v19 = vsel %vm543_vm2, 0.0, %v497_v59 }
 0x145   : > { %v563_v26 = vmax.f32 %v460_v24, %v546_v19 }
 0x14a   : > { %v422_v10 = vpop.permute.xlu1 %421 }
 0x14b   : > { %v465_v15 = vmax.f32 %v1138_v5, %v422_v10  ;;  %v428_v16 = vpop.permute.xlu0 %427  ;;  %v495_v42 = vpop.permute.xlu2 %494  ;;  %v600_v5 = vrot.slane %v594_v22, 4 }
 0x14c   : > { %v545_v21 = vsel %vm543_vm2, 0.0, %v495_v42  ;;  %v468_v53 = vmax.f32 %v1140_v6, %v428_v16  ;;  %v558_v6 = vsel %vm543_vm2, 0.0, %v1183_v39  ;;  %v474_v39 = vmax.f32 %v1116_v56, %v1193_v54 }
 0x14d   : > { %v568_v18 = vmax.f32 %v465_v15, %v551_v48  ;;  %v562_v25 = vmax.f32 %v459_v12, %v545_v21 }
 0x14f   : > { %v584_v38 = vmax.f32 %v583_v11, %v562_v25  ;;  %v587_v29 = vmax.f32 %v567_v9, %v568_v18  ;;  %v467_v11 = vmax.f32 %v1128_v63, %v1191_v50  ;;  %v472_v63 = vmax.f32 %v1074_v31, %v1181_v36 }
 0x150   : > { %v470_v25 = vmax.f32 %v1153_v13, %v1197_v60  ;;  %v473_v31 = vmax.f32 %v1114_v55, %v1187_v46 }
 0x151   : > { %v592_v32 = vmax.f32 %v584_v38, %v563_v26  ;;  %v595_v43 = vmax.f32 %v587_v29, %v1189_v47  ;;  %v570_v48 = vmax.f32 %v467_v11, %v553_v3  ;;  %v575_v36 = vmax.f32 %v472_v63, %v558_v6 }
 0x152   : > { %v499_v34 = vpop.permute.xlu1 %498 }
 0x153   : > { %v602_v37 = vsel %vm601_vm3, %v600_v5, %v592_v32  ;;  %v603_v40 = vrot.slane %v592_v32, 4  ;;  %v547_v45 = vsel %vm543_vm2, 0.0, %v499_v34  ;;  %v513_v41 = vpop.permute.xlu0 %512  ;;  %v613_v52 = vrot.slane %v595_v43, 4 }
 0x154   : > { %v564_v44 = vmax.f32 %v461_v33, %v547_v45  ;;  %v608_v51 = vperm.slane %v602_v37, %v1212_v35  ;;  %v554_v12 = vsel %vm543_vm2, 0.0, %v513_v41  ;;  %v588_v50 = vmax.f32 %v1189_v47, %v570_v48 }
 0x155   : > { %v604_v49 = vsel %vm601_vm3, %v594_v22, %v603_v40  ;;  %v571_v21 = vmax.f32 %v468_v53, %v554_v12  ;;  %v576_v5 = vmax.f32 %v473_v31, %v559_v27  ;;  %v980_v34 = vmov 1934713408  }
 0x156   : > { %v585_v23 = vmax.f32 %v563_v26, %v564_v44  ;;  %v612_v62 = vperm.slane %v604_v49, %v1212_v35  ;;  %v651_v0 = vrot.slane %v608_v51, 4  ;;  %v654_v37 = vunpack.c.l.s4 %v980_v34 }
 0x157   : > { %v596_v28 = vmax.f32 %v588_v50, %v571_v21  ;;  %v591_v41 = vmax.f32 %v575_v36, %v576_v5 }
 0x158   : > { %v593_v30 = vmax.f32 %v585_v23, %v565_v8  ;;  %v663_v8 = vrot.slane %v612_v62, 4  ;;  %v655_v23 = vunpack.c.0.s8 %v654_v37 }
 0x159   : > { %v627_v13 = vrot.slane %v596_v28, 4 }
 0x15a   : > { %v614_v58 = vsel %vm601_vm3, %v613_v52, %v593_v30  ;;  %v615_v59 = vrot.slane %v593_v30, 4  ;;  %v430_v61 = vpop.permute.xlu1 %429 }
 0x15b   : > { %v620_v1 = vperm.slane %v614_v58, %v1212_v35  ;;  %v517_v2 = vpop.permute.xlu0 %516 }
 0x15c   : > { %v616_v4 = vsel %vm601_vm3, %v595_v43, %v615_v59  ;;  %v556_v22 = vsel %vm543_vm2, 0.0, %v517_v2 }
 0x15d   : > { %v649_v7 = vrot.slane %v620_v1, 4  ;;  %v652_v9 = vsel %vm601_vm3, %v620_v1, %v651_v0  ;;  %v624_v10 = vperm.slane %v616_v4, %v1212_v35  ;;  %v573_v38 = vmax.f32 %v470_v25, %v556_v22 }
 0x15e   : > { %v660_v58 = vperm.slane %v652_v9, %v655_v23 }
 0x15f   : > { %v650_v14 = vsel %vm601_vm3, %v649_v7, %v608_v51  ;;  %v664_v15 = vsel %vm601_vm3, %v624_v10, %v663_v8  ;;  %v661_v42 = vrot.slane %v624_v10, 4 }
 0x160   : > { %v656_v59 = vperm.slane %v650_v14, %v655_v23  ;;  %v672_v2 = vperm.slane %v664_v15, %v655_v23 }
 0x161   : > { %v662_v19 = vsel %vm601_vm3, %v661_v42, %v612_v62  ;;  %v703_v42 = vrot.slane %v660_v58, 4 }
 0x162   : > { %v519_v24 = vpop.permute.xlu1 %518  ;;  %v668_v8 = vperm.slane %v662_v19, %v655_v23  ;;  %v699_v14 = vrot.slane %v656_v59, 4 }
 0x163   : > { %v434_v18 = vpop.permute.xlu0 %433  ;;  %v557_v16 = vsel %vm543_vm2, 0.0, %v519_v24 }
 0x164   : > { %v471_v26 = vmax.f32 %v1167_v20, %v434_v18  ;;  %v469_v20 = vmax.f32 %v1159_v17, %v430_v61  ;;  %v707_v63 = vrot.slane %v668_v8, 4 }
 0x166   : > { %v574_v29 = vmax.f32 %v471_v26, %v557_v16 }
 0x168   : > { %v590_v47 = vmax.f32 %v573_v38, %v574_v29 }
 0x16a   : > { %v598_v60 = vmax.f32 %v590_v47, %v575_v36  ;;  %v515_v32 = vpop.permute.xlu1 %514 }
 0x16b   : > { %v555_v33 = vsel %vm543_vm2, 0.0, %v515_v32  ;;  %v525_v57 = vpop.permute.xlu0 %524 }
 0x16c   : > { %v625_v40 = vrot.slane %v598_v60, 4  ;;  %v628_v45 = vsel %vm601_vm3, %v598_v60, %v627_v13  ;;  %v572_v55 = vmax.f32 %v469_v20, %v555_v33  ;;  %v560_v46 = vsel %vm543_vm2, 0.0, %v525_v57 }
 0x16d   : > { %v577_v43 = vmax.f32 %v474_v39, %v560_v46  ;;  %v636_v54 = vperm.slane %v628_v45, %v1212_v35 }
 0x16e   : > { %v626_v17 = vsel %vm601_vm3, %v625_v40, %v596_v28  ;;  %v589_v44 = vmax.f32 %v571_v21, %v572_v55  ;;  %v711_v21 = vrot.slane %v672_v2, 4 }
 0x16f   : > { %v599_v49 = vmax.f32 %v591_v41, %v577_v43  ;;  %v632_v56 = vperm.slane %v626_v17, %v1212_v35  ;;  %v687_v4 = vrot.slane %v636_v54, 4 }
 0x170   : > { %v597_v51 = vmax.f32 %v589_v44, %v573_v38 }
 0x171   : > { %v637_v52 = vrot.slane %v599_v49, 4  ;;  %v675_v1 = vrot.slane %v632_v56, 4 }
 0x172   : > { %v639_v30 = vrot.slane %v597_v51, 4 }
 0x173   : > { %v638_v62 = vsel %vm601_vm3, %v637_v52, %v597_v51 }
 0x174   : > { %v640_v61 = vsel %vm601_vm3, %v599_v49, %v639_v30  ;;  %v644_v0 = vperm.slane %v638_v62, %v1212_v35 }
 0x175   : > { %v648_v3 = vperm.slane %v640_v61, %v1212_v35 }
 0x176   : > { %v676_v7 = vsel %vm601_vm3, %v644_v0, %v675_v1  ;;  %v673_v10 = vrot.slane %v644_v0, 4 }
 0x177   : > { %v685_v11 = vrot.slane %v648_v3, 4  ;;  %v684_v12 = vperm.slane %v676_v7, %v655_v23  ;;  %v688_v48 = vsel %vm601_vm3, %v648_v3, %v687_v4 }
 0x178   : > { %v674_v9 = vsel %vm601_vm3, %v673_v10, %v632_v56  ;;  %v696_v53 = vperm.slane %v688_v48, %v655_v23 }
 0x179   : > { %v704_v24 = vsel %vm601_vm3, %v684_v12, %v703_v42  ;;  %v701_v15 = vrot.slane %v684_v12, 4  ;;  %v680_v22 = vperm.slane %v674_v9, %v655_v23  ;;  %v686_v35 = vsel %vm601_vm3, %v685_v11, %v636_v54 }
 0x17a   : > { %722 = vrot.lane.b32.xlu0 %v704_v24, %s981_s6  ;;  %v709_v18 = vrot.slane %v696_v53, 4  ;;  %v692_v19 = vperm.slane %v686_v35, %v655_v23  ;;  %v712_v50 = vsel %vm601_vm3, %v696_v53, %v711_v21 }
 0x17b   : > { %v702_v25 = vsel %vm601_vm3, %v701_v15, %v660_v58  ;;  %v697_v26 = vrot.slane %v680_v22, 4  ;;  %v700_v6 = vsel %vm601_vm3, %v680_v22, %v699_v14 }
 0x17c   : > { %718 = vrot.lane.b32.xlu2 %v702_v25, %s982_s7  ;;  %714 = vrot.lane.b32.xlu1 %v700_v6, %s983_s8  ;;  %v710_v16 = vsel %vm601_vm3, %v709_v18, %v672_v2  ;;  %v708_v27 = vsel %vm601_vm3, %v692_v19, %v707_v63  ;;  %v705_v28 = vrot.slane %v692_v19, 4 }
 0x17d   : > { %v698_v38 = vsel %vm601_vm3, %v697_v26, %v656_v59 }
 0x17e   : > { %v706_v29 = vsel %vm601_vm3, %v705_v28, %v668_v8 }
 0x182   : > { %734 = vrot.lane.b32.xlu0 %v710_v16, %s984_s9 }
 0x184   : > { %730 = vrot.lane.b32.xlu2 %v708_v27, %s985_s10  ;;  %726 = vrot.lane.b32.xlu1 %v706_v29, %s986_s11 }
 0x18c   : > { %738 = vrot.lane.b32.xlu1 %v712_v50, %s978_s5 }
 0x1d6   : > { %v719_v36 = vpop.permute.xlu2 %718 }
 0x1de   : > { %v731_v39 = vpop.permute.xlu2 %730 }
 0x1ec   : > { %v723_v5 = vpop.permute.xlu0 %722 }
 0x1ee   : > { %v715_v31 = vpop.permute.xlu1 %714 }
 0x1ef   : > { %v742_v47 = vsel %vm741_vm4, %v698_v38, %v715_v31 }
 0x1f0   : > { %v744_v13 = vsel %vm743_vm5, %v742_v47, %v719_v36 }
 0x1f1   : > { %v746_v60 = vsel %vm745_vm6, %v744_v13, %v723_v5 }
 0x1f4   : > { %v735_v57 = vpop.permute.xlu0 %734 }
 0x1f6   : > { %v727_v20 = vpop.permute.xlu1 %726 }
 0x1f7   : > { %v748_v32 = vsel %vm747_vm7, %v746_v60, %v727_v20 }
 0x1f8   : > { %v750_v33 = vsel %vm749_vm8, %v748_v32, %v731_v39 }
 0x1f9   : > { %v752_v37 = vsel %vm751_vm9, %v750_v33, %v735_v57 }
 0x1fe   : > { %v739_v34 = vpop.permute.xlu1 %738 }
 0x1ff   : > { %v754_v40 = vsel %vm753_vm10, %v752_v37, %v739_v34 }
 0x200   : > { %755 = vst [vmem:[%s188_s19] sm:$0xff] %v754_v40 }
 0x201 PF: > { %s13_s14 = sadd.s32 1, %s976_s14   ;;  %s1290_s12 = smov %s972_s13 }
 0x202   : > { %p10_p5 = scmp.ge.s32.totalorder %s13_s14, 4   ;;  %s1291_s13 = smov %s1293_s15 }
 0x204   :  { %12 = sbr.rel (!%p10_p5) target bundleno = 2 (0x2), region = 63 }

</bundles_post_ra>
